<compile_context>
chip_gen: v6e
topology: v6e:2x2x1
jax: 0.10.0
libtpu: 0.0.40
codegen_flags: <defaults>
</compile_context>

<pallas_src>
import functools

import jax
import jax.numpy as jnp
from jax.experimental import pallas as pl
from jax.experimental.pallas import tpu as pltpu


def _lstm_fc_kernel(x_ref, wih_ref, whh_ref, b_ref, wfc_ref, bfc_ref, out_ref,
                    *, T, Bp):
    # x_ref:   (T*Bp, I)  time-major, batch-padded input (flattened)
    # wih_ref: (I, 4H)    input->hidden weights (transposed, g-cols pre-scaled x2)
    # whh_ref: (H, 4H)    hidden->hidden weights (transposed, g-cols pre-scaled x2)
    # b_ref:   (1, 4H)    combined bias (b_ih + b_hh, g-slice pre-scaled x2), f32
    # wfc_ref: (H, Op)    final linear weights (transposed, lane-padded)
    # bfc_ref: (1, Op)    final linear bias (lane-padded), f32
    # out_ref: (Bp, Op)
    H = whh_ref.shape[0]

    w_hh = whh_ref[...]                          # resident across the recurrence

    # ---- Hoisted input projection: one batched MXU matmul for all timesteps,
    # with the (pre-scaled) bias broadcast folded in once (not per step).
    xw = jnp.dot(x_ref[...], wih_ref[...],
                 preferred_element_type=jnp.float32) + b_ref[...]    # (T*Bp, 4H)

    # ---- Peeled t = 0 step: h == c == 0  =>  gates == xw[0:Bp];
    # no h @ W_hh matmul, no cast, no f*c term.
    sig0 = jax.nn.sigmoid(xw[0:Bp, :])                               # one EUP pass
    c = sig0[:, 0 * H:1 * H] * (2.0 * sig0[:, 2 * H:3 * H] - 1.0)    # i * tanh(g)
    h = sig0[:, 3 * H:4 * H] * jnp.tanh(c)                           # o * tanh(c)

    # ---- Remaining steps: one h @ W_hh matmul + ONE full-tile sigmoid each;
    # tanh(g-preact) is recovered on the VPU as 2*sigmoid(2x) - 1.
    # TODO(synk): keep W_hh resident in the MXU weight registers across the
    # recurrence (pltpu.matmul_push_rhs / matmul_acc_lhs / matmul_pop) to
    # avoid re-pushing the RHS every step (MRF on v5e/v6e, MRB on v7x).
    # TODO(synk): for long sequences, grid over T-chunks (BlockSpec on x,
    # pipeline_mode=pl.Buffered(2-3), T axis "arbitrary") with h/c carried in
    # VMEM scratch instead of materializing the whole xw projection; size the
    # chunk for v7x's 64 MiB VMEM.
    # TODO(synk): if H scales, make H a multiple of 128 (or reblock the gate
    # axis) so the i/f/g/o slices and the c/h updates are lane-tile aligned.
    for t in range(1, T):
        gates = xw[t * Bp:(t + 1) * Bp, :] + jnp.dot(
            h.astype(w_hh.dtype), w_hh,
            preferred_element_type=jnp.float32)                      # (Bp, 4H)
        sig = jax.nn.sigmoid(gates)                                  # one EUP pass
        i_g = sig[:, 0 * H:1 * H]
        f_g = sig[:, 1 * H:2 * H]
        g_g = 2.0 * sig[:, 2 * H:3 * H] - 1.0    # == tanh(pre-activation), VPU only
        o_g = sig[:, 3 * H:4 * H]
        c = f_g * c + i_g * g_g
        h = o_g * jnp.tanh(c)

    # ---- Final Linear on the last hidden state; lane-dense (Bp, Op) store.
    out = jnp.dot(h.astype(wfc_ref.dtype), wfc_ref[...],
                  preferred_element_type=jnp.float32) + bfc_ref[...]
    out_ref[...] = out.astype(out_ref.dtype)


def prepare_params(params, *, use_bf16=True):
    """One-time weight layout prep (hoisted out of the per-call forward).

    Transposes to right-multiply form, combines the biases, pre-scales the
    g-gate columns by 2 (so tanh can be recovered from the single sigmoid
    pass), lane-pads the FC output, and optionally casts matmul operands to
    bf16 (accumulation / bias / state stay f32 inside the kernel).
    """
    w_ih, w_hh, b_ih, b_hh, w_fc, b_fc = (
        params["w_ih"], params["w_hh"], params["b_ih"],
        params["b_hh"], params["w_fc"], params["b_fc"])
    H = w_hh.shape[1]
    O = w_fc.shape[0]
    Op = ((max(O, 128) + 127) // 128) * 128

    # Gate pre-scale: g is the 3rd quarter in PyTorch's [i, f, g, o] order.
    gate_scale = jnp.concatenate([
        jnp.ones((2 * H,), jnp.float32),
        jnp.full((H,), 2.0, jnp.float32),
        jnp.ones((H,), jnp.float32)])

    wih_t = jnp.transpose(w_ih).astype(jnp.float32) * gate_scale       # (I, 4H)
    whh_t = jnp.transpose(w_hh).astype(jnp.float32) * gate_scale       # (H, 4H)
    bias = ((b_ih + b_hh).astype(jnp.float32) * gate_scale).reshape(1, 4 * H)
    wfc_t = jnp.pad(jnp.transpose(w_fc).astype(jnp.float32),
                    ((0, 0), (0, Op - O)))                              # (H, Op)
    bfc = jnp.pad(b_fc.reshape(1, O).astype(jnp.float32),
                  ((0, 0), (0, Op - O)))                                # (1, Op)

    mm_dtype = jnp.bfloat16 if use_bf16 else jnp.float32
    return {
        "wih_t": jax.device_put(wih_t.astype(mm_dtype)),
        "whh_t": jax.device_put(whh_t.astype(mm_dtype)),
        "bias": jax.device_put(bias),
        "wfc_t": jax.device_put(wfc_t.astype(mm_dtype)),
        "bfc": jax.device_put(bfc),
        "H": H, "O": O, "Op": Op,
    }


def modelo_lstm_forward(x_btI, prep):
    """Forward of ModeloLSTM. x_btI: (B, T, I) batch-first, like PyTorch."""
    B, T, I = x_btI.shape
    O, Op = prep["O"], prep["Op"]
    mm_dtype = prep["wih_t"].dtype

    # Pad batch up to the 8-sublane width so the kernel's output store is a
    # single unmasked (8,128) tile.
    Bp = ((max(B, 8) + 7) // 8) * 8

    # Minimal per-call x glue (layout only): pad batch -> time-major -> flatten.
    x_p = jnp.pad(x_btI.astype(mm_dtype),
                  ((0, Bp - B), (0, 0), (0, 0)))                       # (Bp, T, I)
    x2d = jnp.transpose(x_p, (1, 0, 2)).reshape(T * Bp, I)             # (T*Bp, I)

    kernel = functools.partial(_lstm_fc_kernel, T=T, Bp=Bp)
    out_p = pl.pallas_call(
        kernel,
        out_shape=jax.ShapeDtypeStruct((Bp, Op), jnp.float32),
        in_specs=[pl.BlockSpec(memory_space=pltpu.MemorySpace.VMEM)] * 6,
        out_specs=pl.BlockSpec(memory_space=pltpu.MemorySpace.VMEM),
        compiler_params=pltpu.CompilerParams(
            # 32 MiB is plenty here and stays within v7x's smaller (64 MiB
            # physical) VMEM budget.
            vmem_limit_bytes=32 * 1024 * 1024),
    )(x2d, prep["wih_t"], prep["whh_t"], prep["bias"],
      prep["wfc_t"], prep["bfc"])

    # TODO(synk): for larger batches, add a batch-tile grid axis with
    # dimension_semantics=("parallel",) so v7x's second TensorCore is used.
    return out_p[:B, :O]


def _reference_forward(x_btI, params):
    """Pure-JAX reference matching nn.LSTM(batch_first=True) + Linear."""
    w_ih, w_hh, b_ih, b_hh, w_fc, b_fc = (
        params["w_ih"], params["w_hh"], params["b_ih"],
        params["b_hh"], params["w_fc"], params["b_fc"])
    B, T, I = x_btI.shape
    H = w_hh.shape[1]
    h = jnp.zeros((B, H), jnp.float32)
    c = jnp.zeros((B, H), jnp.float32)
    for t in range(T):
        g = x_btI[:, t, :] @ w_ih.T + b_ih + h @ w_hh.T + b_hh
        i_g = jax.nn.sigmoid(g[:, 0 * H:1 * H])
        f_g = jax.nn.sigmoid(g[:, 1 * H:2 * H])
        g_g = jnp.tanh(g[:, 2 * H:3 * H])
        o_g = jax.nn.sigmoid(g[:, 3 * H:4 * H])
        c = f_g * c + i_g * g_g
        h = o_g * jnp.tanh(c)
    return h @ w_fc.T + b_fc


if __name__ == "__main__":
    # Small shapes implied by the forward: (batch, seq, input_size)
    B, T, I, H, O = 2, 8, 4, 32, 8

    key = jax.random.PRNGKey(0)
    ks = jax.random.split(key, 7)
    scale = 1.0 / jnp.sqrt(jnp.float32(H))
    params = {
        "w_ih": jax.random.uniform(ks[0], (4 * H, I), jnp.float32, -scale, scale),
        "w_hh": jax.random.uniform(ks[1], (4 * H, H), jnp.float32, -scale, scale),
        "b_ih": jax.random.uniform(ks[2], (4 * H,), jnp.float32, -scale, scale),
        "b_hh": jax.random.uniform(ks[3], (4 * H,), jnp.float32, -scale, scale),
        "w_fc": jax.random.uniform(ks[4], (O, H), jnp.float32, -scale, scale),
        "b_fc": jax.random.uniform(ks[5], (O,), jnp.float32, -scale, scale),
    }
    x = jax.random.normal(ks[6], (B, T, I), jnp.float32)

    ref = _reference_forward(x, params)

    # ---- f32 matmul-operand path: near-exact (tanh is computed as
    # 2*sigmoid(2x)-1, a mathematically exact identity; tolerance covers the
    # tiny difference between the two transcendental approximations).
    prep_f32 = prepare_params(params, use_bf16=False)
    fwd_f32 = jax.jit(lambda xv: modelo_lstm_forward(xv, prep_f32))
    out_f32 = jax.block_until_ready(fwd_f32(x))
    assert out_f32.shape == (B, O)
    assert jnp.allclose(out_f32, ref, atol=1e-4, rtol=1e-4), "f32 mismatch vs reference"

    # ---- Default bf16 matmul-operand path: wider tolerance for bf16 rounding
    # (expected, not a bug); accumulation / bias / state / gate math stay f32.
    prep_bf16 = prepare_params(params, use_bf16=True)
    fwd_bf16 = jax.jit(lambda xv: modelo_lstm_forward(xv, prep_bf16))
    out_bf16 = jax.block_until_ready(fwd_bf16(x))
    assert out_bf16.shape == (B, O)
    assert jnp.allclose(out_bf16, ref, atol=3e-2, rtol=3e-2), "bf16 mismatch vs reference"

    print("KERNEL_OK")
</pallas_src>

<mosaic_0001>
module attributes {stable_mosaic.version = 11 : i64} {
  func.func @_lstm_fc_kernel(%arg0: memref<64x4xf32, #tpu.memory_space<vmem>>, %arg1: memref<4x128xf32, #tpu.memory_space<vmem>>, %arg2: memref<32x128xf32, #tpu.memory_space<vmem>>, %arg3: memref<1x128xf32, #tpu.memory_space<vmem>>, %arg4: memref<32x128xf32, #tpu.memory_space<vmem>>, %arg5: memref<1x128xf32, #tpu.memory_space<vmem>>, %arg6: memref<8x128xf32, #tpu.memory_space<vmem>>) attributes {dimension_semantics = [], scalar_prefetch = 0 : i64, scratch_operands = 0 : i64, tpu.core_type = #tpu.core_type<tc>} {
    %c0 = arith.constant 0 : index
    %c0_0 = arith.constant 0 : index
    %0 = vector.load %arg2[%c0, %c0_0] : memref<32x128xf32, #tpu.memory_space<vmem>>, vector<32x128xf32>
    %c0_1 = arith.constant 0 : index
    %c0_2 = arith.constant 0 : index
    %1 = vector.load %arg0[%c0_1, %c0_2] : memref<64x4xf32, #tpu.memory_space<vmem>>, vector<64x4xf32>
    %c0_3 = arith.constant 0 : index
    %c0_4 = arith.constant 0 : index
    %2 = vector.load %arg1[%c0_3, %c0_4] : memref<4x128xf32, #tpu.memory_space<vmem>>, vector<4x128xf32>
    %cst = arith.constant dense<0.000000e+00> : vector<64x128xf32>
    %3 = tpu.matmul %1, %2, %cst {dimension_numbers = #tpu.dot_dimension_numbers<[1], [0], [0], [1], [0, 0, 1, 1], [], []>} : vector<64x4xf32>, vector<4x128xf32>, vector<64x128xf32> -> vector<64x128xf32>
    %c0_5 = arith.constant 0 : index
    %c0_6 = arith.constant 0 : index
    %4 = vector.load %arg3[%c0_5, %c0_6] : memref<1x128xf32, #tpu.memory_space<vmem>>, vector<1x128xf32>
    %5 = vector.broadcast %4 : vector<1x128xf32> to vector<64x128xf32>
    %6 = arith.addf %3, %5 : vector<64x128xf32>
    %7 = vector.extract_strided_slice %6 {offsets = [0, 0], sizes = [8, 128], strides = [1, 1]} : vector<64x128xf32> to vector<8x128xf32>
    %8 = arith.negf %7 : vector<8x128xf32>
    %9 = math.exp %8 : vector<8x128xf32>
    %cst_7 = arith.constant 1.000000e+00 : f32
    %10 = vector.broadcast %cst_7 : f32 to vector<8x128xf32>
    %11 = arith.addf %10, %9 : vector<8x128xf32>
    %12 = arith.divf %10, %11 : vector<8x128xf32>
    %13 = vector.extract_strided_slice %12 {offsets = [0, 0], sizes = [8, 32], strides = [1, 1]} : vector<8x128xf32> to vector<8x32xf32>
    %14 = vector.extract_strided_slice %12 {offsets = [0, 64], sizes = [8, 32], strides = [1, 1]} : vector<8x128xf32> to vector<8x32xf32>
    %cst_8 = arith.constant 2.000000e+00 : f32
    %15 = vector.broadcast %cst_8 : f32 to vector<8x32xf32>
    %16 = arith.mulf %15, %14 : vector<8x32xf32>
    %cst_9 = arith.constant 1.000000e+00 : f32
    %17 = vector.broadcast %cst_9 : f32 to vector<8x32xf32>
    %18 = arith.subf %16, %17 : vector<8x32xf32>
    %19 = arith.mulf %13, %18 : vector<8x32xf32>
    %20 = vector.extract_strided_slice %12 {offsets = [0, 96], sizes = [8, 32], strides = [1, 1]} : vector<8x128xf32> to vector<8x32xf32>
    %21 = math.tanh %19 : vector<8x32xf32>
    %22 = arith.mulf %20, %21 : vector<8x32xf32>
    %23 = vector.extract_strided_slice %6 {offsets = [8, 0], sizes = [8, 128], strides = [1, 1]} : vector<64x128xf32> to vector<8x128xf32>
    %cst_10 = arith.constant dense<0.000000e+00> : vector<8x128xf32>
    %24 = tpu.matmul %22, %0, %cst_10 {dimension_numbers = #tpu.dot_dimension_numbers<[1], [0], [0], [1], [0, 0, 1, 1], [], []>} : vector<8x32xf32>, vector<32x128xf32>, vector<8x128xf32> -> vector<8x128xf32>
    %25 = arith.addf %23, %24 : vector<8x128xf32>
    %26 = arith.negf %25 : vector<8x128xf32>
    %27 = math.exp %26 : vector<8x128xf32>
    %cst_11 = arith.constant 1.000000e+00 : f32
    %28 = vector.broadcast %cst_11 : f32 to vector<8x128xf32>
    %29 = arith.addf %28, %27 : vector<8x128xf32>
    %30 = arith.divf %28, %29 : vector<8x128xf32>
    %31 = vector.extract_strided_slice %30 {offsets = [0, 0], sizes = [8, 32], strides = [1, 1]} : vector<8x128xf32> to vector<8x32xf32>
    %32 = vector.extract_strided_slice %30 {offsets = [0, 32], sizes = [8, 32], strides = [1, 1]} : vector<8x128xf32> to vector<8x32xf32>
    %33 = vector.extract_strided_slice %30 {offsets = [0, 64], sizes = [8, 32], strides = [1, 1]} : vector<8x128xf32> to vector<8x32xf32>
    %cst_12 = arith.constant 2.000000e+00 : f32
    %34 = vector.broadcast %cst_12 : f32 to vector<8x32xf32>
    %35 = arith.mulf %34, %33 : vector<8x32xf32>
    %cst_13 = arith.constant 1.000000e+00 : f32
    %36 = vector.broadcast %cst_13 : f32 to vector<8x32xf32>
    %37 = arith.subf %35, %36 : vector<8x32xf32>
    %38 = vector.extract_strided_slice %30 {offsets = [0, 96], sizes = [8, 32], strides = [1, 1]} : vector<8x128xf32> to vector<8x32xf32>
    %39 = arith.mulf %32, %19 : vector<8x32xf32>
    %40 = arith.mulf %31, %37 : vector<8x32xf32>
    %41 = arith.addf %39, %40 : vector<8x32xf32>
    %42 = math.tanh %41 : vector<8x32xf32>
    %43 = arith.mulf %38, %42 : vector<8x32xf32>
    %44 = vector.extract_strided_slice %6 {offsets = [16, 0], sizes = [8, 128], strides = [1, 1]} : vector<64x128xf32> to vector<8x128xf32>
    %cst_14 = arith.constant dense<0.000000e+00> : vector<8x128xf32>
    %45 = tpu.matmul %43, %0, %cst_14 {dimension_numbers = #tpu.dot_dimension_numbers<[1], [0], [0], [1], [0, 0, 1, 1], [], []>} : vector<8x32xf32>, vector<32x128xf32>, vector<8x128xf32> -> vector<8x128xf32>
    %46 = arith.addf %44, %45 : vector<8x128xf32>
    %47 = arith.negf %46 : vector<8x128xf32>
    %48 = math.exp %47 : vector<8x128xf32>
    %cst_15 = arith.constant 1.000000e+00 : f32
    %49 = vector.broadcast %cst_15 : f32 to vector<8x128xf32>
    %50 = arith.addf %49, %48 : vector<8x128xf32>
    %51 = arith.divf %49, %50 : vector<8x128xf32>
    %52 = vector.extract_strided_slice %51 {offsets = [0, 0], sizes = [8, 32], strides = [1, 1]} : vector<8x128xf32> to vector<8x32xf32>
    %53 = vector.extract_strided_slice %51 {offsets = [0, 32], sizes = [8, 32], strides = [1, 1]} : vector<8x128xf32> to vector<8x32xf32>
    %54 = vector.extract_strided_slice %51 {offsets = [0, 64], sizes = [8, 32], strides = [1, 1]} : vector<8x128xf32> to vector<8x32xf32>
    %cst_16 = arith.constant 2.000000e+00 : f32
    %55 = vector.broadcast %cst_16 : f32 to vector<8x32xf32>
    %56 = arith.mulf %55, %54 : vector<8x32xf32>
    %cst_17 = arith.constant 1.000000e+00 : f32
    %57 = vector.broadcast %cst_17 : f32 to vector<8x32xf32>
    %58 = arith.subf %56, %57 : vector<8x32xf32>
    %59 = vector.extract_strided_slice %51 {offsets = [0, 96], sizes = [8, 32], strides = [1, 1]} : vector<8x128xf32> to vector<8x32xf32>
    %60 = arith.mulf %53, %41 : vector<8x32xf32>
    %61 = arith.mulf %52, %58 : vector<8x32xf32>
    %62 = arith.addf %60, %61 : vector<8x32xf32>
    %63 = math.tanh %62 : vector<8x32xf32>
    %64 = arith.mulf %59, %63 : vector<8x32xf32>
    %65 = vector.extract_strided_slice %6 {offsets = [24, 0], sizes = [8, 128], strides = [1, 1]} : vector<64x128xf32> to vector<8x128xf32>
    %cst_18 = arith.constant dense<0.000000e+00> : vector<8x128xf32>
    %66 = tpu.matmul %64, %0, %cst_18 {dimension_numbers = #tpu.dot_dimension_numbers<[1], [0], [0], [1], [0, 0, 1, 1], [], []>} : vector<8x32xf32>, vector<32x128xf32>, vector<8x128xf32> -> vector<8x128xf32>
    %67 = arith.addf %65, %66 : vector<8x128xf32>
    %68 = arith.negf %67 : vector<8x128xf32>
    %69 = math.exp %68 : vector<8x128xf32>
    %cst_19 = arith.constant 1.000000e+00 : f32
    %70 = vector.broadcast %cst_19 : f32 to vector<8x128xf32>
    %71 = arith.addf %70, %69 : vector<8x128xf32>
    %72 = arith.divf %70, %71 : vector<8x128xf32>
    %73 = vector.extract_strided_slice %72 {offsets = [0, 0], sizes = [8, 32], strides = [1, 1]} : vector<8x128xf32> to vector<8x32xf32>
    %74 = vector.extract_strided_slice %72 {offsets = [0, 32], sizes = [8, 32], strides = [1, 1]} : vector<8x128xf32> to vector<8x32xf32>
    %75 = vector.extract_strided_slice %72 {offsets = [0, 64], sizes = [8, 32], strides = [1, 1]} : vector<8x128xf32> to vector<8x32xf32>
    %cst_20 = arith.constant 2.000000e+00 : f32
    %76 = vector.broadcast %cst_20 : f32 to vector<8x32xf32>
    %77 = arith.mulf %76, %75 : vector<8x32xf32>
    %cst_21 = arith.constant 1.000000e+00 : f32
    %78 = vector.broadcast %cst_21 : f32 to vector<8x32xf32>
    %79 = arith.subf %77, %78 : vector<8x32xf32>
    %80 = vector.extract_strided_slice %72 {offsets = [0, 96], sizes = [8, 32], strides = [1, 1]} : vector<8x128xf32> to vector<8x32xf32>
    %81 = arith.mulf %74, %62 : vector<8x32xf32>
    %82 = arith.mulf %73, %79 : vector<8x32xf32>
    %83 = arith.addf %81, %82 : vector<8x32xf32>
    %84 = math.tanh %83 : vector<8x32xf32>
    %85 = arith.mulf %80, %84 : vector<8x32xf32>
    %86 = vector.extract_strided_slice %6 {offsets = [32, 0], sizes = [8, 128], strides = [1, 1]} : vector<64x128xf32> to vector<8x128xf32>
    %cst_22 = arith.constant dense<0.000000e+00> : vector<8x128xf32>
    %87 = tpu.matmul %85, %0, %cst_22 {dimension_numbers = #tpu.dot_dimension_numbers<[1], [0], [0], [1], [0, 0, 1, 1], [], []>} : vector<8x32xf32>, vector<32x128xf32>, vector<8x128xf32> -> vector<8x128xf32>
    %88 = arith.addf %86, %87 : vector<8x128xf32>
    %89 = arith.negf %88 : vector<8x128xf32>
    %90 = math.exp %89 : vector<8x128xf32>
    %cst_23 = arith.constant 1.000000e+00 : f32
    %91 = vector.broadcast %cst_23 : f32 to vector<8x128xf32>
    %92 = arith.addf %91, %90 : vector<8x128xf32>
    %93 = arith.divf %91, %92 : vector<8x128xf32>
    %94 = vector.extract_strided_slice %93 {offsets = [0, 0], sizes = [8, 32], strides = [1, 1]} : vector<8x128xf32> to vector<8x32xf32>
    %95 = vector.extract_strided_slice %93 {offsets = [0, 32], sizes = [8, 32], strides = [1, 1]} : vector<8x128xf32> to vector<8x32xf32>
    %96 = vector.extract_strided_slice %93 {offsets = [0, 64], sizes = [8, 32], strides = [1, 1]} : vector<8x128xf32> to vector<8x32xf32>
    %cst_24 = arith.constant 2.000000e+00 : f32
    %97 = vector.broadcast %cst_24 : f32 to vector<8x32xf32>
    %98 = arith.mulf %97, %96 : vector<8x32xf32>
    %cst_25 = arith.constant 1.000000e+00 : f32
    %99 = vector.broadcast %cst_25 : f32 to vector<8x32xf32>
    %100 = arith.subf %98, %99 : vector<8x32xf32>
    %101 = vector.extract_strided_slice %93 {offsets = [0, 96], sizes = [8, 32], strides = [1, 1]} : vector<8x128xf32> to vector<8x32xf32>
    %102 = arith.mulf %95, %83 : vector<8x32xf32>
    %103 = arith.mulf %94, %100 : vector<8x32xf32>
    %104 = arith.addf %102, %103 : vector<8x32xf32>
    %105 = math.tanh %104 : vector<8x32xf32>
    %106 = arith.mulf %101, %105 : vector<8x32xf32>
    %107 = vector.extract_strided_slice %6 {offsets = [40, 0], sizes = [8, 128], strides = [1, 1]} : vector<64x128xf32> to vector<8x128xf32>
    %cst_26 = arith.constant dense<0.000000e+00> : vector<8x128xf32>
    %108 = tpu.matmul %106, %0, %cst_26 {dimension_numbers = #tpu.dot_dimension_numbers<[1], [0], [0], [1], [0, 0, 1, 1], [], []>} : vector<8x32xf32>, vector<32x128xf32>, vector<8x128xf32> -> vector<8x128xf32>
    %109 = arith.addf %107, %108 : vector<8x128xf32>
    %110 = arith.negf %109 : vector<8x128xf32>
    %111 = math.exp %110 : vector<8x128xf32>
    %cst_27 = arith.constant 1.000000e+00 : f32
    %112 = vector.broadcast %cst_27 : f32 to vector<8x128xf32>
    %113 = arith.addf %112, %111 : vector<8x128xf32>
    %114 = arith.divf %112, %113 : vector<8x128xf32>
    %115 = vector.extract_strided_slice %114 {offsets = [0, 0], sizes = [8, 32], strides = [1, 1]} : vector<8x128xf32> to vector<8x32xf32>
    %116 = vector.extract_strided_slice %114 {offsets = [0, 32], sizes = [8, 32], strides = [1, 1]} : vector<8x128xf32> to vector<8x32xf32>
    %117 = vector.extract_strided_slice %114 {offsets = [0, 64], sizes = [8, 32], strides = [1, 1]} : vector<8x128xf32> to vector<8x32xf32>
    %cst_28 = arith.constant 2.000000e+00 : f32
    %118 = vector.broadcast %cst_28 : f32 to vector<8x32xf32>
    %119 = arith.mulf %118, %117 : vector<8x32xf32>
    %cst_29 = arith.constant 1.000000e+00 : f32
    %120 = vector.broadcast %cst_29 : f32 to vector<8x32xf32>
    %121 = arith.subf %119, %120 : vector<8x32xf32>
    %122 = vector.extract_strided_slice %114 {offsets = [0, 96], sizes = [8, 32], strides = [1, 1]} : vector<8x128xf32> to vector<8x32xf32>
    %123 = arith.mulf %116, %104 : vector<8x32xf32>
    %124 = arith.mulf %115, %121 : vector<8x32xf32>
    %125 = arith.addf %123, %124 : vector<8x32xf32>
    %126 = math.tanh %125 : vector<8x32xf32>
    %127 = arith.mulf %122, %126 : vector<8x32xf32>
    %128 = vector.extract_strided_slice %6 {offsets = [48, 0], sizes = [8, 128], strides = [1, 1]} : vector<64x128xf32> to vector<8x128xf32>
    %cst_30 = arith.constant dense<0.000000e+00> : vector<8x128xf32>
    %129 = tpu.matmul %127, %0, %cst_30 {dimension_numbers = #tpu.dot_dimension_numbers<[1], [0], [0], [1], [0, 0, 1, 1], [], []>} : vector<8x32xf32>, vector<32x128xf32>, vector<8x128xf32> -> vector<8x128xf32>
    %130 = arith.addf %128, %129 : vector<8x128xf32>
    %131 = arith.negf %130 : vector<8x128xf32>
    %132 = math.exp %131 : vector<8x128xf32>
    %cst_31 = arith.constant 1.000000e+00 : f32
    %133 = vector.broadcast %cst_31 : f32 to vector<8x128xf32>
    %134 = arith.addf %133, %132 : vector<8x128xf32>
    %135 = arith.divf %133, %134 : vector<8x128xf32>
    %136 = vector.extract_strided_slice %135 {offsets = [0, 0], sizes = [8, 32], strides = [1, 1]} : vector<8x128xf32> to vector<8x32xf32>
    %137 = vector.extract_strided_slice %135 {offsets = [0, 32], sizes = [8, 32], strides = [1, 1]} : vector<8x128xf32> to vector<8x32xf32>
    %138 = vector.extract_strided_slice %135 {offsets = [0, 64], sizes = [8, 32], strides = [1, 1]} : vector<8x128xf32> to vector<8x32xf32>
    %cst_32 = arith.constant 2.000000e+00 : f32
    %139 = vector.broadcast %cst_32 : f32 to vector<8x32xf32>
    %140 = arith.mulf %139, %138 : vector<8x32xf32>
    %cst_33 = arith.constant 1.000000e+00 : f32
    %141 = vector.broadcast %cst_33 : f32 to vector<8x32xf32>
    %142 = arith.subf %140, %141 : vector<8x32xf32>
    %143 = vector.extract_strided_slice %135 {offsets = [0, 96], sizes = [8, 32], strides = [1, 1]} : vector<8x128xf32> to vector<8x32xf32>
    %144 = arith.mulf %137, %125 : vector<8x32xf32>
    %145 = arith.mulf %136, %142 : vector<8x32xf32>
    %146 = arith.addf %144, %145 : vector<8x32xf32>
    %147 = math.tanh %146 : vector<8x32xf32>
    %148 = arith.mulf %143, %147 : vector<8x32xf32>
    %149 = vector.extract_strided_slice %6 {offsets = [56, 0], sizes = [8, 128], strides = [1, 1]} : vector<64x128xf32> to vector<8x128xf32>
    %cst_34 = arith.constant dense<0.000000e+00> : vector<8x128xf32>
    %150 = tpu.matmul %148, %0, %cst_34 {dimension_numbers = #tpu.dot_dimension_numbers<[1], [0], [0], [1], [0, 0, 1, 1], [], []>} : vector<8x32xf32>, vector<32x128xf32>, vector<8x128xf32> -> vector<8x128xf32>
    %151 = arith.addf %149, %150 : vector<8x128xf32>
    %152 = arith.negf %151 : vector<8x128xf32>
    %153 = math.exp %152 : vector<8x128xf32>
    %cst_35 = arith.constant 1.000000e+00 : f32
    %154 = vector.broadcast %cst_35 : f32 to vector<8x128xf32>
    %155 = arith.addf %154, %153 : vector<8x128xf32>
    %156 = arith.divf %154, %155 : vector<8x128xf32>
    %157 = vector.extract_strided_slice %156 {offsets = [0, 0], sizes = [8, 32], strides = [1, 1]} : vector<8x128xf32> to vector<8x32xf32>
    %158 = vector.extract_strided_slice %156 {offsets = [0, 32], sizes = [8, 32], strides = [1, 1]} : vector<8x128xf32> to vector<8x32xf32>
    %159 = vector.extract_strided_slice %156 {offsets = [0, 64], sizes = [8, 32], strides = [1, 1]} : vector<8x128xf32> to vector<8x32xf32>
    %cst_36 = arith.constant 2.000000e+00 : f32
    %160 = vector.broadcast %cst_36 : f32 to vector<8x32xf32>
    %161 = arith.mulf %160, %159 : vector<8x32xf32>
    %cst_37 = arith.constant 1.000000e+00 : f32
    %162 = vector.broadcast %cst_37 : f32 to vector<8x32xf32>
    %163 = arith.subf %161, %162 : vector<8x32xf32>
    %164 = vector.extract_strided_slice %156 {offsets = [0, 96], sizes = [8, 32], strides = [1, 1]} : vector<8x128xf32> to vector<8x32xf32>
    %165 = arith.mulf %158, %146 : vector<8x32xf32>
    %166 = arith.mulf %157, %163 : vector<8x32xf32>
    %167 = arith.addf %165, %166 : vector<8x32xf32>
    %168 = math.tanh %167 : vector<8x32xf32>
    %169 = arith.mulf %164, %168 : vector<8x32xf32>
    %c0_38 = arith.constant 0 : index
    %c0_39 = arith.constant 0 : index
    %170 = vector.load %arg4[%c0_38, %c0_39] : memref<32x128xf32, #tpu.memory_space<vmem>>, vector<32x128xf32>
    %cst_40 = arith.constant dense<0.000000e+00> : vector<8x128xf32>
    %171 = tpu.matmul %169, %170, %cst_40 {dimension_numbers = #tpu.dot_dimension_numbers<[1], [0], [0], [1], [0, 0, 1, 1], [], []>} : vector<8x32xf32>, vector<32x128xf32>, vector<8x128xf32> -> vector<8x128xf32>
    %c0_41 = arith.constant 0 : index
    %c0_42 = arith.constant 0 : index
    %172 = vector.load %arg5[%c0_41, %c0_42] : memref<1x128xf32, #tpu.memory_space<vmem>>, vector<1x128xf32>
    %173 = vector.broadcast %172 : vector<1x128xf32> to vector<8x128xf32>
    %174 = arith.addf %171, %173 : vector<8x128xf32>
    %c0_43 = arith.constant 0 : index
    %c0_44 = arith.constant 0 : index
    %175 = vector.load %arg6[%c0_43, %c0_44] : memref<8x128xf32, #tpu.memory_space<vmem>>, vector<8x128xf32>
    tpu.vector_store %arg6[%c0_43, %c0_44], %174 {strides = array<i32>} : memref<8x128xf32, #tpu.memory_space<vmem>>, vector<8x128xf32>,
    return
  }
}

</mosaic_0001>

<bundles_post_ra>
// kernel: _lambda_.1
= control target key start
LH: loop header
LB: loop body
LE: loop exit
PB: predicated region body
PF: predicated region fallthrough
CT: control target
= control target key end

     0   :  { %vm68_vm0 = vcmask 1043456   ;;  %vm43_vm1 = vcmask 31744   ;;  %v1239_v15 = vmov 0.0   ;;  %vm1240_vm2 = vmmov 0   ;;  %s1242_s12 = smov 32   ;;  %s1491_s1 = inlined_call_operand.vmem [shape: f32[4,128], index: 1, kind: input, shape index: {}]   ;;  %s1492_s0 = inlined_call_operand.vmem [shape: f32[64,4], index: 0, kind: input, shape index: {}]   ;;  %s1493_s3 = inlined_call_operand.vmem [shape: f32[1,128], index: 3, kind: input, shape index: {}]   ;;  %s1494_s2 = inlined_call_operand.vmem [shape: f32[32,128], index: 2, kind: input, shape index: {}]   ;;  %s1495_s4 = inlined_call_operand.vmem [shape: f32[32,128], index: 4, kind: input, shape index: {}]   ;;  %s1496_s5 = inlined_call_operand.vmem [shape: f32[1,128], index: 5, kind: input, shape index: {}]   ;;  %s1497_s6 = inlined_call_operand.vmem [shape: f32[8,128], index: 6, kind: output, shape index: {}]  }
   0x1   :  { %v35_v0 = vld [vmem:[%s1491_s1] sm:$0xf]  ;;  %v28_v2 = vld [vmem:[%s1492_s0 + $0x8] sm:$0xff]  ;;  %s1238_s1 = smov 64   ;;  %1097 = vmatprep.subr.mxu1 %v1239_v15  ;;  %v1302_v16 = vld [vmem:[%s1494_s2 + $0x18] sm:$0xff]  ;;  %1105 = vmatprep.mubr.msk.f32.mxu1 %vm1240_vm2, %v1239_v15  ;;  %vm199_vm3 = vcmask 261120  }
   0x2   :  { %v27_v1 = vld [vmem:[%s1492_s0] sm:$0xff]  ;;  %1083 = vmatprep.subr.msk.mxu0 %vm68_vm0, %v35_v0  ;;  %v1307_v17 = vld [vmem:[%s1494_s2 + $0x10] sm:$0xff]  ;;  %1098 = vmatpush3.msra.mxu1 %v1302_v16  ;;  %v1317_v18 = vld [vmem:[%s1494_s2 + $0x8] sm:$0xff] }
   0x3   :  { %1085 = vmatprep.mubr.msk.f32.mxu0 %vm43_vm1, %v27_v1  ;;  %1084 = vmatpush3.msk.msra.mxu0 %vm68_vm0, %v35_v0  ;;  %v1294_v4 = vld [vmem:[%s1493_s3] ss:$0 sm:$0xff]  ;;  %v29_v40 = vld [vmem:[%s1492_s0 + $0x10] sm:$0xff]  ;;  %v30_v41 = vld [vmem:[%s1492_s0 + $0x18] sm:$0xff] }
   0x4   :  { %1086 = vmatmul.mubr.msk.f32.vlgmr.msra.gmra.mxu0 %vm43_vm1, %v28_v2  ;;  %1119 = vmatprep.subr.mxu0 %v1239_v15  ;;  %v1326_v19 = vld [vmem:[%s1494_s2] sm:$0xff]  ;;  %s1241_s2 = smov 96   ;;  %v32_v0 = vld [vmem:[%s1492_s0 + $0x28] sm:$0xff]  ;;  %v33_v1 = vld [vmem:[%s1492_s0 + $0x30] sm:$0xff] }
   0x5   :  { %1099 = vmatprep.subr.mxu1 %v1239_v15  ;;  %1120 = vmatpush3.msra.mxu0 %v1302_v16  ;;  %v31_v63 = vld [vmem:[%s1492_s0 + $0x20] sm:$0xff]  ;;  %v34_v2 = vld [vmem:[%s1492_s0 + $0x38] sm:$0xff] }
   0x6   :  { %1100 = vmatpush3.msra.mxu1 %v1307_v17  ;;  %1121 = vmatprep.subr.mxu0 %v1239_v15 }
   0x7   :  { %1101 = vmatprep.subr.mxu1 %v1239_v15  ;;  %1122 = vmatpush3.msra.mxu0 %v1307_v17 }
   0x8   :  { %1102 = vmatpush3.msra.mxu1 %v1317_v18  ;;  %1123 = vmatprep.subr.mxu0 %v1239_v15 }
   0x9   :  { %1103 = vmatprep.subr.mxu1 %v1239_v15  ;;  %1124 = vmatpush3.msra.mxu0 %v1317_v18 }
   0xa   :  { %1104 = vmatpush3.msra.mxu1 %v1326_v19  ;;  %1125 = vmatprep.subr.mxu0 %v1239_v15 }
   0xb   :  { %1108 = vmatprep.subr.mxu1 %v1239_v15  ;;  %1126 = vmatpush3.msra.mxu0 %v1326_v19 }
   0xc   :  { %1141 = vmatprep.subr.mxu0 %v1239_v15  ;;  %1088 = vmatprep.mubr.msk.f32.mxu0 %vm43_vm1, %v29_v40 }
   0xd   :  { %1089 = vmatmul.mubr.msk.f32.gmra.mxu0 %vm43_vm1, %v30_v41 }
   0xe   :  { %1091 = vmatprep.mubr.msk.f32.mxu0 %vm43_vm1, %v31_v63 }
  0x11   :  { %1092 = vmatmul.mubr.msk.f32.gmra.mxu0 %vm43_vm1, %v32_v0 }
  0x12   :  { %1094 = vmatprep.mubr.msk.f32.mxu0 %vm43_vm1, %v33_v1 }
  0x15   :  { %1095 = vmatmul.mubr.msk.f32.gmra.mxu0 %vm43_vm1, %v34_v2 }
  0x16   :  { %1127 = vmatprep.mubr.msk.f32.mxu0 %vm1240_vm2, %v1239_v15 }
  0xc4   :  { %v1289_v3 = vpop.f32.mrf.mxu0 }
  0xc5   :  { %v144_v24 = vadd.f32 %v1289_v3, %v1294_v4 }
  0xc6   :  { %v138_v5 = vpop.f32.mrf.mxu0 }
  0xc7   :  { %v139_v6 = vadd.f32 %v1294_v4, %v138_v5 }
  0xc9   :  { %v1009_v7 = vmul.f32 -1.442695, %v139_v6 }
  0xcb   :  { %1190 = vpow2.f32 %v1009_v7 }
  0xcd   :  { %v1090_v46 = vpop.f32.mrf.mxu0 }
  0xcf   :  { %v148_v47 = vpop.f32.mrf.mxu0 }
  0xd0   :  { %v149_v48 = vadd.f32 %v1294_v4, %v148_v47 }
  0xd8   :  { %v1191_v8 = vpop.eup %1190 }
  0xd9   :  { %v180_v9 = vadd.f32 1.0, %v1191_v8  ;;  %v1410_v8 = vpop.f32.mrf.mxu0 }
  0xdb   :  { %1192 = vrcp.f32 %v180_v9  ;;  %v158_v9 = vpop.f32.mrf.mxu0 }
  0xe8   :  { %v1193_v10 = vpop.eup %1192 }
  0xe9   :  { %v183_v11 = vmul.f32 2.0, %v1193_v10 }
  0xeb   :  { %v1010_v12 = vadd.f32 -1.0, %v183_v11 }
  0xed   :  { %186 = vrot.lane.b32.xlu0 %v1010_v12, %s1238_s1  ;;  %v154_v12 = vadd.f32 %v1090_v46, %v1294_v4 }
 0x15f   :  { %v187_v13 = vpop.permute.xlu0 %186 }
 0x160   :  { %v189_v14 = vmul.f32 %v1193_v10, %v187_v13 }
 0x162   :  { %1194 = vtanh.f32 %v189_v14 }
 0x16f   :  { %v1195_v20 = vpop.eup %1194 }
 0x170   :  { %192 = vrot.lane.b32.xlu0 %v1195_v20, %s1241_s2 }
 0x174   :  { %282 = vrot.lane.b32.xlu0 %v189_v14, %s1242_s12 }
 0x1e2   :  { %v193_v21 = vpop.permute.xlu0 %192 }
 0x1e3   :  { %v195_v22 = vmul.f32 %v1193_v10, %v193_v21  ;;  %v1412_v10 = vpop.f32.mrf.mxu0 }
 0x1e5   :  { %197 = vrot.lane.b32.xlu1 %v195_v22, %s1242_s12  ;;  %v1414_v11 = vpop.f32.mrf.mxu0 }
 0x1e6   :  { %v283_v36 = vpop.permute.xlu0 %282 }
 0x257   :  { %v198_v23 = vpop.permute.xlu1 %197 }
 0x258   :  { %1106 = vmatmul.mubr.msk.f32.vlgmr.msra.gmra.mxu1 %vm199_vm3, %v198_v23 }
 0x259   :  { %1109 = vmatpush3.msra.mxu1 %v1302_v16  ;;  %1116 = vmatprep.mubr.msk.f32.mxu1 %vm1240_vm2, %v1239_v15 }
 0x25a   :  { %1110 = vmatprep.subr.mxu1 %v1239_v15 }
 0x25b   :  { %1111 = vmatpush3.msra.mxu1 %v1307_v17 }
 0x25c   :  { %1112 = vmatprep.subr.mxu1 %v1239_v15 }
 0x25d   :  { %1113 = vmatpush3.msra.mxu1 %v1317_v18 }
 0x25e   :  { %1114 = vmatprep.subr.mxu1 %v1239_v15 }
 0x25f   :  { %1115 = vmatpush3.msra.mxu1 %v1326_v19 }
 0x260   :  { %1130 = vmatprep.subr.mxu1 %v1239_v15 }
 0x318   :  { %v268_v25 = vpop.f32.mrf.mxu1 }
 0x319   :  { %v272_v26 = vadd.f32 %v268_v25, %v144_v24 }
 0x31a   :  { %v1107_v27 = vpop.f32.mrf.mxu1 }
 0x31b   :  { %v1012_v28 = vmul.f32 -1.442695, %v272_v26 }
 0x31d   :  { %1196 = vpow2.f32 %v1012_v28 }
 0x32a   :  { %v1197_v29 = vpop.eup %1196 }
 0x32b   :  { %v276_v30 = vadd.f32 1.0, %v1197_v29 }
 0x32d   :  { %1198 = vrcp.f32 %v276_v30 }
 0x33a   :  { %v1199_v31 = vpop.eup %1198 }
 0x33b   :  { %v279_v32 = vmul.f32 2.0, %v1199_v31  ;;  %v285_v37 = vmul.f32 %v1199_v31, %v283_v36  ;;  %v159_v36 = vadd.f32 %v1294_v4, %v158_v9 }
 0x33d   :  { %v1013_v33 = vadd.f32 -1.0, %v279_v32 }
 0x33f   :  { %287 = vrot.lane.b32.xlu1 %v1013_v33, %s1238_s1 }
 0x3b1   :  { %v288_v34 = vpop.permute.xlu1 %287 }
 0x3b2   :  { %v290_v35 = vmul.f32 %v1199_v31, %v288_v34 }
 0x3b4   :  { %292 = vrot.lane.b32.xlu1 %v290_v35, %s1242_s12 }
 0x426   :  { %v293_v38 = vpop.permute.xlu1 %292 }
 0x427   :  { %v295_v39 = vadd.f32 %v293_v38, %v285_v37 }
 0x429   :  { %1200 = vtanh.f32 %v295_v39 }
 0x436   :  { %v1201_v42 = vpop.eup %1200 }
 0x437   :  { %298 = vrot.lane.b32.xlu0 %v1201_v42, %s1238_s1 }
 0x4a9   :  { %v299_v43 = vpop.permute.xlu0 %298 }
 0x4aa   :  { %v301_v44 = vmul.f32 %v1199_v31, %v299_v43 }
 0x4ac   :  { %303 = vrot.lane.b32.xlu1 %v301_v44, %s1242_s12 }
 0x51e   :  { %v304_v45 = vpop.permute.xlu1 %303 }
 0x51f   :  { %1117 = vmatmul.mubr.msk.f32.vlgmr.msra.gmra.mxu1 %vm199_vm3, %v304_v45 }
 0x520   :  { %1131 = vmatpush3.msra.mxu1 %v1302_v16  ;;  %1138 = vmatprep.mubr.msk.f32.mxu1 %vm1240_vm2, %v1239_v15 }
 0x521   :  { %1132 = vmatprep.subr.mxu1 %v1239_v15 }
 0x522   :  { %1133 = vmatpush3.msra.mxu1 %v1307_v17 }
 0x523   :  { %1134 = vmatprep.subr.mxu1 %v1239_v15 }
 0x524   :  { %1135 = vmatpush3.msra.mxu1 %v1317_v18 }
 0x525   :  { %1136 = vmatprep.subr.mxu1 %v1239_v15 }
 0x526   :  { %1137 = vmatpush3.msra.mxu1 %v1326_v19 }
 0x527   :  { %1152 = vmatprep.subr.mxu1 %v1239_v15 }
 0x5df   :  { %v373_v49 = vpop.f32.mrf.mxu1 }
 0x5e0   :  { %v377_v50 = vadd.f32 %v373_v49, %v149_v48 }
 0x5e1   :  { %v1118_v51 = vpop.f32.mrf.mxu1 }
 0x5e2   :  { %v1015_v52 = vmul.f32 -1.442695, %v377_v50 }
 0x5e4   :  { %1202 = vpow2.f32 %v1015_v52 }
 0x5f1   :  { %v1203_v53 = vpop.eup %1202 }
 0x5f2   :  { %v381_v54 = vadd.f32 1.0, %v1203_v53 }
 0x5f4   :  { %1204 = vrcp.f32 %v381_v54 }
 0x601   :  { %v1205_v55 = vpop.eup %1204 }
 0x602   :  { %v384_v56 = vmul.f32 2.0, %v1205_v55  ;;  %v386_v60 = vmul.f32 %v1205_v55, %v295_v39 }
 0x604   :  { %v1016_v57 = vadd.f32 -1.0, %v384_v56 }
 0x606   :  { %388 = vrot.lane.b32.xlu0 %v1016_v57, %s1238_s1 }
 0x678   :  { %v389_v58 = vpop.permute.xlu0 %388 }
 0x679   :  { %v391_v59 = vmul.f32 %v1205_v55, %v389_v58 }
 0x67b   :  { %393 = vrot.lane.b32.xlu1 %v391_v59, %s1242_s12 }
 0x6ed   :  { %v394_v61 = vpop.permute.xlu1 %393 }
 0x6ee   :  { %v396_v62 = vadd.f32 %v394_v61, %v386_v60 }
 0x6f0   :  { %1206 = vtanh.f32 %v396_v62 }
 0x6fd   :  { %v1207_v3 = vpop.eup %1206 }
 0x6fe   :  { %399 = vrot.lane.b32.xlu0 %v1207_v3, %s1238_s1 }
 0x770   :  { %v400_v5 = vpop.permute.xlu0 %399 }
 0x771   :  { %v402_v6 = vmul.f32 %v1205_v55, %v400_v5  ;;  %v164_v55 = vadd.f32 %v1410_v8, %v1294_v4 }
 0x773   :  { %404 = vrot.lane.b32.xlu1 %v402_v6, %s1242_s12 }
 0x7e5   :  { %v405_v7 = vpop.permute.xlu1 %404 }
 0x7e6   :  { %1128 = vmatmul.mubr.msk.f32.vlgmr.msra.gmra.mxu0 %vm199_vm3, %v405_v7  ;;  %v169_v7 = vadd.f32 %v1294_v4, %v1414_v11 }
 0x7e7   :  { %1142 = vmatpush3.msra.mxu0 %v1302_v16  ;;  %1149 = vmatprep.mubr.msk.f32.mxu0 %vm1240_vm2, %v1239_v15 }
 0x7e8   :  { %1143 = vmatprep.subr.mxu0 %v1239_v15 }
 0x7e9   :  { %1144 = vmatpush3.msra.mxu0 %v1307_v17 }
 0x7ea   :  { %1145 = vmatprep.subr.mxu0 %v1239_v15 }
 0x7eb   :  { %1146 = vmatpush3.msra.mxu0 %v1317_v18 }
 0x7ec   :  { %1147 = vmatprep.subr.mxu0 %v1239_v15 }
 0x7ed   :  { %1148 = vmatpush3.msra.mxu0 %v1326_v19 }
 0x7ee   :  { %1163 = vmatprep.subr.mxu0 %v1239_v15 }
 0x8a6   :  { %v474_v13 = vpop.f32.mrf.mxu0 }
 0x8a7   :  { %v478_v14 = vadd.f32 %v474_v13, %v154_v12 }
 0x8a8   :  { %v1129_v20 = vpop.f32.mrf.mxu0 }
 0x8a9   :  { %v1018_v21 = vmul.f32 -1.442695, %v478_v14 }
 0x8ab   :  { %1208 = vpow2.f32 %v1018_v21 }
 0x8b8   :  { %v1209_v22 = vpop.eup %1208 }
 0x8b9   :  { %v482_v23 = vadd.f32 1.0, %v1209_v22 }
 0x8bb   :  { %1210 = vrcp.f32 %v482_v23 }
 0x8c8   :  { %v1211_v24 = vpop.eup %1210 }
 0x8c9   :  { %v485_v25 = vmul.f32 2.0, %v1211_v24  ;;  %v487_v29 = vmul.f32 %v1211_v24, %v396_v62 }
 0x8cb   :  { %v1019_v26 = vadd.f32 -1.0, %v485_v25 }
 0x8cd   :  { %489 = vrot.lane.b32.xlu0 %v1019_v26, %s1238_s1 }
 0x93f   :  { %v490_v27 = vpop.permute.xlu0 %489 }
 0x940   :  { %v492_v28 = vmul.f32 %v1211_v24, %v490_v27 }
 0x942   :  { %494 = vrot.lane.b32.xlu1 %v492_v28, %s1242_s12 }
 0x9b4   :  { %v495_v30 = vpop.permute.xlu1 %494 }
 0x9b5   :  { %v497_v31 = vadd.f32 %v495_v30, %v487_v29 }
 0x9b7   :  { %1212 = vtanh.f32 %v497_v31 }
 0x9c4   :  { %v1213_v32 = vpop.eup %1212 }
 0x9c5   :  { %500 = vrot.lane.b32.xlu0 %v1213_v32, %s1238_s1  ;;  %v174_v32 = vadd.f32 %v1412_v10, %v1294_v4  ;;  %v911_v10 = vld [vmem:[%s1495_s4 + $0x18] sm:$0xff] }
 0xa37   :  { %v501_v33 = vpop.permute.xlu0 %500 }
 0xa38   :  { %v503_v34 = vmul.f32 %v1211_v24, %v501_v33 }
 0xa3a   :  { %505 = vrot.lane.b32.xlu1 %v503_v34, %s1242_s12 }
 0xaac   :  { %v506_v35 = vpop.permute.xlu1 %505 }
 0xaad   :  { %1139 = vmatmul.mubr.msk.f32.vlgmr.msra.gmra.mxu1 %vm199_vm3, %v506_v35 }
 0xaae   :  { %1153 = vmatpush3.msra.mxu1 %v1302_v16  ;;  %1160 = vmatprep.mubr.msk.f32.mxu1 %vm1240_vm2, %v1239_v15 }
 0xaaf   :  { %1154 = vmatprep.subr.mxu1 %v1239_v15 }
 0xab0   :  { %1155 = vmatpush3.msra.mxu1 %v1307_v17 }
 0xab1   :  { %1156 = vmatprep.subr.mxu1 %v1239_v15 }
 0xab2   :  { %1157 = vmatpush3.msra.mxu1 %v1317_v18 }
 0xab3   :  { %1158 = vmatprep.subr.mxu1 %v1239_v15 }
 0xab4   :  { %1159 = vmatpush3.msra.mxu1 %v1326_v19 }
 0xab5   :  { %1174 = vmatprep.subr.mxu1 %v1239_v15 }
 0xb6d   :  { %v575_v37 = vpop.f32.mrf.mxu1 }
 0xb6e   :  { %v579_v38 = vadd.f32 %v575_v37, %v159_v36 }
 0xb6f   :  { %v1140_v39 = vpop.f32.mrf.mxu1 }
 0xb70   :  { %v1021_v40 = vmul.f32 -1.442695, %v579_v38 }
 0xb72   :  { %1214 = vpow2.f32 %v1021_v40 }
 0xb7f   :  { %v1215_v41 = vpop.eup %1214 }
 0xb80   :  { %v583_v42 = vadd.f32 1.0, %v1215_v41 }
 0xb82   :  { %1216 = vrcp.f32 %v583_v42 }
 0xb8f   :  { %v1217_v43 = vpop.eup %1216 }
 0xb90   :  { %v586_v44 = vmul.f32 2.0, %v1217_v43  ;;  %v588_v48 = vmul.f32 %v1217_v43, %v497_v31 }
 0xb92   :  { %v1022_v45 = vadd.f32 -1.0, %v586_v44 }
 0xb94   :  { %590 = vrot.lane.b32.xlu0 %v1022_v45, %s1238_s1 }
 0xc06   :  { %v591_v46 = vpop.permute.xlu0 %590 }
 0xc07   :  { %v593_v47 = vmul.f32 %v1217_v43, %v591_v46  ;;  %v910_v46 = vld [vmem:[%s1495_s4 + $0x10] sm:$0xff] }
 0xc09   :  { %595 = vrot.lane.b32.xlu1 %v593_v47, %s1242_s12  ;;  %v909_v47 = vld [vmem:[%s1495_s4 + $0x8] sm:$0xff] }
 0xc7b   :  { %v596_v49 = vpop.permute.xlu1 %595 }
 0xc7c   :  { %v598_v50 = vadd.f32 %v596_v49, %v588_v48  ;;  %v908_v48 = vld [vmem:[%s1495_s4] sm:$0xff] }
 0xc7e   :  { %1218 = vtanh.f32 %v598_v50 }
 0xc8b   :  { %v1219_v51 = vpop.eup %1218 }
 0xc8c   :  { %601 = vrot.lane.b32.xlu0 %v1219_v51, %s1238_s1 }
 0xcfe   :  { %v602_v52 = vpop.permute.xlu0 %601 }
 0xcff   :  { %v604_v53 = vmul.f32 %v1217_v43, %v602_v52 }
 0xd01   :  { %606 = vrot.lane.b32.xlu1 %v604_v53, %s1242_s12  ;;  %v1032_v53 = vld [vmem:[%s1496_s5] ss:$0 sm:$0xff] }
 0xd73   :  { %v607_v54 = vpop.permute.xlu1 %606 }
 0xd74   :  { %1150 = vmatmul.mubr.msk.f32.vlgmr.msra.gmra.mxu0 %vm199_vm3, %v607_v54 }
 0xd75   :  { %1164 = vmatpush3.msra.mxu0 %v1302_v16  ;;  %1171 = vmatprep.mubr.msk.f32.mxu0 %vm1240_vm2, %v1239_v15 }
 0xd76   :  { %1165 = vmatprep.subr.mxu0 %v1239_v15 }
 0xd77   :  { %1166 = vmatpush3.msra.mxu0 %v1307_v17 }
 0xd78   :  { %1167 = vmatprep.subr.mxu0 %v1239_v15 }
 0xd79   :  { %1168 = vmatpush3.msra.mxu0 %v1317_v18 }
 0xd7a   :  { %1169 = vmatprep.subr.mxu0 %v1239_v15 }
 0xd7b   :  { %1170 = vmatpush3.msra.mxu0 %v1326_v19 }
 0xe34   :  { %v676_v56 = vpop.f32.mrf.mxu0 }
 0xe35   :  { %v680_v16 = vadd.f32 %v676_v56, %v164_v55 }
 0xe36   :  { %v1151_v57 = vpop.f32.mrf.mxu0 }
 0xe37   :  { %v1024_v58 = vmul.f32 -1.442695, %v680_v16 }
 0xe39   :  { %1220 = vpow2.f32 %v1024_v58 }
 0xe46   :  { %v1221_v59 = vpop.eup %1220 }
 0xe47   :  { %v684_v60 = vadd.f32 1.0, %v1221_v59 }
 0xe49   :  { %1222 = vrcp.f32 %v684_v60 }
 0xe56   :  { %v1223_v17 = vpop.eup %1222 }
 0xe57   :  { %v687_v61 = vmul.f32 2.0, %v1223_v17  ;;  %v689_v19 = vmul.f32 %v1223_v17, %v598_v50 }
 0xe59   :  { %v1025_v62 = vadd.f32 -1.0, %v687_v61 }
 0xe5b   :  { %691 = vrot.lane.b32.xlu0 %v1025_v62, %s1238_s1 }
 0xecd   :  { %v692_v18 = vpop.permute.xlu0 %691 }
 0xece   :  { %v694_v63 = vmul.f32 %v1223_v17, %v692_v18 }
 0xed0   :  { %696 = vrot.lane.b32.xlu1 %v694_v63, %s1242_s12 }
 0xf42   :  { %v697_v0 = vpop.permute.xlu1 %696 }
 0xf43   :  { %v699_v1 = vadd.f32 %v697_v0, %v689_v19 }
 0xf45   :  { %1224 = vtanh.f32 %v699_v1 }
 0xf52   :  { %v1225_v2 = vpop.eup %1224 }
 0xf53   :  { %702 = vrot.lane.b32.xlu0 %v1225_v2, %s1238_s1 }
 0xfc5   :  { %v703_v3 = vpop.permute.xlu0 %702 }
 0xfc6   :  { %v705_v5 = vmul.f32 %v1223_v17, %v703_v3 }
 0xfc8   :  { %707 = vrot.lane.b32.xlu1 %v705_v5, %s1242_s12 }
0x103a   :  { %v708_v6 = vpop.permute.xlu1 %707 }
0x103b   :  { %1161 = vmatmul.mubr.msk.f32.vlgmr.msra.gmra.mxu1 %vm199_vm3, %v708_v6 }
0x103c   :  { %1182 = vmatprep.mubr.msk.f32.mxu1 %vm1240_vm2, %v1239_v15  ;;  %1175 = vmatpush3.msra.mxu1 %v911_v10 }
0x103d   :  { %1176 = vmatprep.subr.mxu1 %v1239_v15 }
0x103e   :  { %1177 = vmatpush3.msra.mxu1 %v910_v46 }
0x103f   :  { %1178 = vmatprep.subr.mxu1 %v1239_v15 }
0x1040   :  { %1179 = vmatpush3.msra.mxu1 %v909_v47 }
0x1041   :  { %1180 = vmatprep.subr.mxu1 %v1239_v15 }
0x1042   :  { %1181 = vmatpush3.msra.mxu1 %v908_v48 }
0x10fb   :  { %v777_v8 = vpop.f32.mrf.mxu1 }
0x10fc   :  { %v781_v9 = vadd.f32 %v777_v8, %v169_v7 }
0x10fd   :  { %v1162_v12 = vpop.f32.mrf.mxu1 }
0x10fe   :  { %v1027_v13 = vmul.f32 -1.442695, %v781_v9 }
0x1100   :  { %1226 = vpow2.f32 %v1027_v13 }
0x110d   :  { %v1227_v14 = vpop.eup %1226 }
0x110e   :  { %v785_v20 = vadd.f32 1.0, %v1227_v14 }
0x1110   :  { %1228 = vrcp.f32 %v785_v20 }
0x111d   :  { %v1229_v21 = vpop.eup %1228 }
0x111e   :  { %v788_v22 = vmul.f32 2.0, %v1229_v21  ;;  %v790_v26 = vmul.f32 %v1229_v21, %v699_v1 }
0x1120   :  { %v1028_v23 = vadd.f32 -1.0, %v788_v22 }
0x1122   :  { %792 = vrot.lane.b32.xlu0 %v1028_v23, %s1238_s1 }
0x1194   :  { %v793_v24 = vpop.permute.xlu0 %792 }
0x1195   :  { %v795_v25 = vmul.f32 %v1229_v21, %v793_v24 }
0x1197   :  { %797 = vrot.lane.b32.xlu1 %v795_v25, %s1242_s12 }
0x1209   :  { %v798_v27 = vpop.permute.xlu1 %797 }
0x120a   :  { %v800_v11 = vadd.f32 %v798_v27, %v790_v26 }
0x120c   :  { %1230 = vtanh.f32 %v800_v11 }
0x1219   :  { %v1231_v28 = vpop.eup %1230 }
0x121a   :  { %803 = vrot.lane.b32.xlu0 %v1231_v28, %s1238_s1 }
0x128c   :  { %v804_v29 = vpop.permute.xlu0 %803 }
0x128d   :  { %v806_v30 = vmul.f32 %v1229_v21, %v804_v29 }
0x128f   :  { %808 = vrot.lane.b32.xlu1 %v806_v30, %s1242_s12 }
0x1301   :  { %v809_v31 = vpop.permute.xlu1 %808 }
0x1302   :  { %1172 = vmatmul.mubr.msk.f32.vlgmr.msra.gmra.mxu0 %vm199_vm3, %v809_v31 }
0x13c2   :  { %v878_v33 = vpop.f32.mrf.mxu0 }
0x13c3   :  { %v882_v34 = vadd.f32 %v878_v33, %v174_v32 }
0x13c4   :  { %v1173_v35 = vpop.f32.mrf.mxu0 }
0x13c5   :  { %v1030_v36 = vmul.f32 -1.442695, %v882_v34 }
0x13c7   :  { %1232 = vpow2.f32 %v1030_v36 }
0x13d4   :  { %v1233_v37 = vpop.eup %1232 }
0x13d5   :  { %v886_v38 = vadd.f32 1.0, %v1233_v37 }
0x13d7   :  { %1234 = vrcp.f32 %v886_v38 }
0x13e4   :  { %v1235_v39 = vpop.eup %1234 }
0x13e5   :  { %v889_v40 = vmul.f32 2.0, %v1235_v39  ;;  %v891_v44 = vmul.f32 %v1235_v39, %v800_v11 }
0x13e7   :  { %v1031_v41 = vadd.f32 -1.0, %v889_v40 }
0x13e9   :  { %893 = vrot.lane.b32.xlu0 %v1031_v41, %s1238_s1 }
0x145b   :  { %v894_v42 = vpop.permute.xlu0 %893 }
0x145c   :  { %v896_v43 = vmul.f32 %v1235_v39, %v894_v42 }
0x145e   :  { %898 = vrot.lane.b32.xlu1 %v896_v43, %s1242_s12 }
0x14d0   :  { %v899_v45 = vpop.permute.xlu1 %898 }
0x14d1   :  { %v901_v4 = vadd.f32 %v899_v45, %v891_v44 }
0x14d3   :  { %1236 = vtanh.f32 %v901_v4 }
0x14e0   :  { %v1237_v49 = vpop.eup %1236 }
0x14e1   :  { %904 = vrot.lane.b32.xlu0 %v1237_v49, %s1238_s1 }
0x1553   :  { %v905_v50 = vpop.permute.xlu0 %904 }
0x1554   :  { %v907_v51 = vmul.f32 %v1235_v39, %v905_v50 }
0x1556   :  { %920 = vrot.lane.b32.xlu1 %v907_v51, %s1242_s12 }
0x15c8   :  { %v921_v52 = vpop.permute.xlu1 %920 }
0x15c9   :  { %1183 = vmatmul.mubr.msk.f32.vlgmr.msra.gmra.mxu1 %vm199_vm3, %v921_v52 }
0x1689   :  { %v990_v54 = vpop.f32.mrf.mxu1 }
0x168a   :  { %v991_v55 = vadd.f32 %v1032_v53, %v990_v54 }
0x168b   :  { %v1184_v56 = vpop.f32.mrf.mxu1 }
0x168c   :  { %994 = vst [vmem:[%s1497_s6] sm:$0xff] %v991_v55 }

</bundles_post_ra>
